<compile_context>
chip_gen: v7x
topology: tpu7x:2x2x1
jax: 0.10.0
libtpu: 0.0.40
codegen_flags: <defaults>
</compile_context>

<pallas_src>
import functools

import jax
import jax.numpy as jnp
from jax.experimental import pallas as pl
from jax.experimental.pallas import tpu as pltpu

IN_DIM = 4
H1, H2, H3 = 32, 64, 64
ACTIONS = 2

K_PAD = 8      # padded input-feature dim (clean f32 sublane block)
H_PAD = 128    # padded hidden / output dim (lane-dense)
MATMUL_DTYPE = jnp.bfloat16


def _round_up(a, m):
    return ((a + m - 1) // m) * m


# ---------------------------------------------------------------------------
# Kernel: full 4-layer MLP for one batch tile.  Weights/biases are resident.
# ---------------------------------------------------------------------------
def dqn_mlp_kernel(x_ref, w1_ref, wrest_ref, b_ref, out_ref):
    def mm(a, w):
        return jnp.dot(a.astype(MATMUL_DTYPE), w.astype(MATMUL_DTYPE),
                       preferred_element_type=jnp.float32)

    h = jnp.maximum(mm(x_ref[...], w1_ref[...]) + b_ref[0:1, :], 0.0)
    h = jnp.maximum(mm(h, wrest_ref[0]) + b_ref[1:2, :], 0.0)
    h = jnp.maximum(mm(h, wrest_ref[1]) + b_ref[2:3, :], 0.0)
    h = jnp.maximum(mm(h, wrest_ref[2]) + b_ref[3:4, :], 0.0)
    out_ref[...] = h


# ---------------------------------------------------------------------------
# Parameter packing (do this once, outside the training/inference step).
# ---------------------------------------------------------------------------
def pack_params(params):
    """Pack (w1,b1,...,w4,b4) into 3 lane-dense, zero-padded buffers."""
    (w1, b1, w2, b2, w3, b3, w4, b4) = params
    w1p = jnp.zeros((K_PAD, H_PAD), jnp.float32).at[:IN_DIM, :H1].set(w1)

    wr = jnp.zeros((3, H_PAD, H_PAD), jnp.float32)
    wr = wr.at[0, :H1, :H2].set(w2)
    wr = wr.at[1, :H2, :H3].set(w3)
    wr = wr.at[2, :H3, :ACTIONS].set(w4)

    bp = jnp.zeros((4, H_PAD), jnp.float32)
    bp = bp.at[0, :H1].set(b1.reshape(-1))
    bp = bp.at[1, :H2].set(b2.reshape(-1))
    bp = bp.at[2, :H3].set(b3.reshape(-1))
    bp = bp.at[3, :ACTIONS].set(b4.reshape(-1))
    return w1p, wr, bp


# ---------------------------------------------------------------------------
# Forward wrapper
# ---------------------------------------------------------------------------
def dqn_forward(x, packed_params, *, tile_b=256):
    """x: (B, 4) float32 -> (B, 2) float32."""
    w1p, wr, bp = packed_params
    B = x.shape[0]

    # Batch tile: multiple of 8 (f32 sublane); cap at 256 (working set << VMEM).
    tb = min(tile_b, _round_up(B, 8))
    num_tiles = pl.cdiv(B, tb)
    Bp = num_tiles * tb

    # Pad batch to a tile multiple and features 4 -> K_PAD with zeros.
    x_pad = jnp.pad(x.astype(jnp.float32),
                    ((0, Bp - B), (0, K_PAD - IN_DIM)))

    flops = 2 * Bp * (K_PAD * H_PAD + 3 * H_PAD * H_PAD)
    bytes_accessed = (Bp * (K_PAD + H_PAD) * 4
                      + (w1p.size + wr.size + bp.size) * 4)

    grid_spec = pltpu.PrefetchScalarGridSpec(
        num_scalar_prefetch=0,
        grid=(num_tiles,),
        in_specs=[
            pl.BlockSpec((tb, K_PAD), lambda i: (i, 0)),          # x tile
            pl.BlockSpec((K_PAD, H_PAD), lambda i: (0, 0)),       # w1 (resident)
            pl.BlockSpec((3, H_PAD, H_PAD), lambda i: (0, 0, 0)), # w2/3/4 (resident)
            pl.BlockSpec((4, H_PAD), lambda i: (0, 0)),           # biases (resident)
        ],
        out_specs=pl.BlockSpec((tb, H_PAD), lambda i: (i, 0)),    # lane-dense out
    )

    out_padded = pl.pallas_call(
        dqn_mlp_kernel,
        out_shape=jax.ShapeDtypeStruct((Bp, H_PAD), jnp.float32),
        grid_spec=grid_spec,
        compiler_params=pltpu.CompilerParams(
            dimension_semantics=("parallel",)),
        cost_estimate=pl.CostEstimate(
            flops=flops, transcendentals=0, bytes_accessed=bytes_accessed),
    )(x_pad, w1p, wr, bp)

    # Drop batch padding and the zero-padded output lanes.
    return out_padded[:B, :ACTIONS]


# ---------------------------------------------------------------------------
# Init (mirrors the PyTorch module: weights ~ N(0, 0.2), default Linear bias
# init U(-1/sqrt(fan_in), +1/sqrt(fan_in))).  Weights stored as (in, out).
# ---------------------------------------------------------------------------
def init_params(key):
    keys = jax.random.split(key, 8)

    def linear(kw, kb, fan_in, fan_out):
        w = 0.2 * jax.random.normal(kw, (fan_in, fan_out), dtype=jnp.float32)
        bound = 1.0 / jnp.sqrt(jnp.float32(fan_in))
        b = jax.random.uniform(kb, (1, fan_out), dtype=jnp.float32,
                               minval=-bound, maxval=bound)
        return w, b

    w1, b1 = linear(keys[0], keys[1], IN_DIM, H1)
    w2, b2 = linear(keys[2], keys[3], H1, H2)
    w3, b3 = linear(keys[4], keys[5], H2, H3)
    w4, b4 = linear(keys[6], keys[7], H3, ACTIONS)
    return (w1, b1, w2, b2, w3, b3, w4, b4)


# ---------------------------------------------------------------------------
# References
# ---------------------------------------------------------------------------
def reference_forward_f32(x, params):
    (w1, b1, w2, b2, w3, b3, w4, b4) = params
    h = jnp.maximum(x @ w1 + b1, 0.0)
    h = jnp.maximum(h @ w2 + b2, 0.0)
    h = jnp.maximum(h @ w3 + b3, 0.0)
    h = jnp.maximum(h @ w4 + b4, 0.0)
    return h


def reference_forward_bf16(x, params):
    """Mirrors the kernel's matmul dtype policy (bf16 inputs, f32 accumulate)."""
    (w1, b1, w2, b2, w3, b3, w4, b4) = params

    def mm(a, w):
        return jnp.dot(a.astype(MATMUL_DTYPE), w.astype(MATMUL_DTYPE),
                       preferred_element_type=jnp.float32)

    h = jnp.maximum(mm(x, w1) + b1, 0.0)
    h = jnp.maximum(mm(h, w2) + b2, 0.0)
    h = jnp.maximum(mm(h, w3) + b3, 0.0)
    h = jnp.maximum(mm(h, w4) + b4, 0.0)
    return h


if __name__ == "__main__":
    key = jax.random.PRNGKey(0)
    k_params, k_x = jax.random.split(key)

    params = init_params(k_params)
    packed = pack_params(params)

    batch = 8
    x = jax.random.normal(k_x, (batch, IN_DIM), dtype=jnp.float32)

    out = dqn_forward(x, packed)
    jax.block_until_ready(out)
    assert out.shape == (batch, ACTIONS)

    # Tight check vs a reference using the same bf16-matmul policy.
    ref_bf16 = reference_forward_bf16(x, params)
    assert jnp.allclose(out, ref_bf16, atol=2e-3, rtol=2e-3), (
        jnp.max(jnp.abs(out - ref_bf16)))

    # Loose semantic check vs the pure-f32 PyTorch-equivalent forward.
    ref_f32 = reference_forward_f32(x, params)
    assert jnp.allclose(out, ref_f32, atol=1e-1, rtol=1e-1), (
        jnp.max(jnp.abs(out - ref_f32)))

    print("KERNEL_OK")
</pallas_src>

<mosaic_0001>
module attributes {stable_mosaic.version = 11 : i64} {
  func.func @dqn_mlp_kernel(%arg0: i32, %arg1: memref<8x8xf32, #tpu.memory_space<vmem>>, %arg2: memref<8x128xf32, #tpu.memory_space<vmem>>, %arg3: memref<3x128x128xf32, #tpu.memory_space<vmem>>, %arg4: memref<4x128xf32, #tpu.memory_space<vmem>>, %arg5: memref<8x128xf32, #tpu.memory_space<vmem>>) attributes {dimension_semantics = [#tpu.dimension_semantics<parallel>], iteration_bounds = array<i64: 1>, scalar_prefetch = 0 : i64, scratch_operands = 0 : i64, tpu.core_type = #tpu.core_type<tc>, window_params = [{transform_indices = @transform_0, window_bounds = array<i64: 8, 8>}, {pipeline_mode = #tpu.pipeline_mode<synchronous>, transform_indices = @transform_1, window_bounds = array<i64: 8, 128>}, {pipeline_mode = #tpu.pipeline_mode<synchronous>, transform_indices = @transform_2, window_bounds = array<i64: 3, 128, 128>}, {pipeline_mode = #tpu.pipeline_mode<synchronous>, transform_indices = @transform_3, window_bounds = array<i64: 4, 128>}, {transform_indices = @transform_4, window_bounds = array<i64: 8, 128>}]} {
    %c0 = arith.constant 0 : index
    %c0_0 = arith.constant 0 : index
    %0 = vector.load %arg1[%c0, %c0_0] : memref<8x8xf32, #tpu.memory_space<vmem>>, vector<8x8xf32>
    %c0_1 = arith.constant 0 : index
    %c0_2 = arith.constant 0 : index
    %1 = vector.load %arg2[%c0_1, %c0_2] : memref<8x128xf32, #tpu.memory_space<vmem>>, vector<8x128xf32>
    %2 = arith.truncf %0 : vector<8x8xf32> to vector<8x8xbf16>
    %3 = arith.truncf %1 : vector<8x128xf32> to vector<8x128xbf16>
    %cst = arith.constant dense<0.000000e+00> : vector<8x128xf32>
    %4 = tpu.matmul %2, %3, %cst {dimension_numbers = #tpu.dot_dimension_numbers<[1], [0], [0], [1], [0, 0, 1, 1], [], []>} : vector<8x8xbf16>, vector<8x128xbf16>, vector<8x128xf32> -> vector<8x128xf32>
    %c0_3 = arith.constant 0 : index
    %c0_4 = arith.constant 0 : index
    %5 = vector.load %arg4[%c0_3, %c0_4] : memref<4x128xf32, #tpu.memory_space<vmem>>, vector<1x128xf32>
    %6 = vector.broadcast %5 : vector<1x128xf32> to vector<8x128xf32>
    %7 = arith.addf %4, %6 : vector<8x128xf32>
    %cst_5 = arith.constant 0.000000e+00 : f32
    %8 = vector.broadcast %cst_5 : f32 to vector<8x128xf32>
    %9 = arith.maximumf %7, %8 : vector<8x128xf32>
    %c0_6 = arith.constant 0 : index
    %c0_7 = arith.constant 0 : index
    %c0_8 = arith.constant 0 : index
    %10 = vector.load %arg3[%c0_6, %c0_7, %c0_8] : memref<3x128x128xf32, #tpu.memory_space<vmem>>, vector<1x128x128xf32>
    %11 = vector.shape_cast %10 : vector<1x128x128xf32> to vector<128x128xf32>
    %12 = arith.truncf %9 : vector<8x128xf32> to vector<8x128xbf16>
    %13 = arith.truncf %11 : vector<128x128xf32> to vector<128x128xbf16>
    %cst_9 = arith.constant dense<0.000000e+00> : vector<8x128xf32>
    %14 = tpu.matmul %12, %13, %cst_9 {dimension_numbers = #tpu.dot_dimension_numbers<[1], [0], [0], [1], [0, 0, 1, 1], [], []>} : vector<8x128xbf16>, vector<128x128xbf16>, vector<8x128xf32> -> vector<8x128xf32>
    %c1 = arith.constant 1 : index
    %c0_10 = arith.constant 0 : index
    %15 = vector.load %arg4[%c1, %c0_10] : memref<4x128xf32, #tpu.memory_space<vmem>>, vector<1x128xf32>
    %16 = vector.broadcast %15 : vector<1x128xf32> to vector<8x128xf32>
    %17 = arith.addf %14, %16 : vector<8x128xf32>
    %cst_11 = arith.constant 0.000000e+00 : f32
    %18 = vector.broadcast %cst_11 : f32 to vector<8x128xf32>
    %19 = arith.maximumf %17, %18 : vector<8x128xf32>
    %c1_12 = arith.constant 1 : index
    %c0_13 = arith.constant 0 : index
    %c0_14 = arith.constant 0 : index
    %20 = vector.load %arg3[%c1_12, %c0_13, %c0_14] : memref<3x128x128xf32, #tpu.memory_space<vmem>>, vector<1x128x128xf32>
    %21 = vector.shape_cast %20 : vector<1x128x128xf32> to vector<128x128xf32>
    %22 = arith.truncf %19 : vector<8x128xf32> to vector<8x128xbf16>
    %23 = arith.truncf %21 : vector<128x128xf32> to vector<128x128xbf16>
    %cst_15 = arith.constant dense<0.000000e+00> : vector<8x128xf32>
    %24 = tpu.matmul %22, %23, %cst_15 {dimension_numbers = #tpu.dot_dimension_numbers<[1], [0], [0], [1], [0, 0, 1, 1], [], []>} : vector<8x128xbf16>, vector<128x128xbf16>, vector<8x128xf32> -> vector<8x128xf32>
    %c2 = arith.constant 2 : index
    %c0_16 = arith.constant 0 : index
    %25 = vector.load %arg4[%c2, %c0_16] : memref<4x128xf32, #tpu.memory_space<vmem>>, vector<1x128xf32>
    %26 = vector.broadcast %25 : vector<1x128xf32> to vector<8x128xf32>
    %27 = arith.addf %24, %26 : vector<8x128xf32>
    %cst_17 = arith.constant 0.000000e+00 : f32
    %28 = vector.broadcast %cst_17 : f32 to vector<8x128xf32>
    %29 = arith.maximumf %27, %28 : vector<8x128xf32>
    %c2_18 = arith.constant 2 : index
    %c0_19 = arith.constant 0 : index
    %c0_20 = arith.constant 0 : index
    %30 = vector.load %arg3[%c2_18, %c0_19, %c0_20] : memref<3x128x128xf32, #tpu.memory_space<vmem>>, vector<1x128x128xf32>
    %31 = vector.shape_cast %30 : vector<1x128x128xf32> to vector<128x128xf32>
    %32 = arith.truncf %29 : vector<8x128xf32> to vector<8x128xbf16>
    %33 = arith.truncf %31 : vector<128x128xf32> to vector<128x128xbf16>
    %cst_21 = arith.constant dense<0.000000e+00> : vector<8x128xf32>
    %34 = tpu.matmul %32, %33, %cst_21 {dimension_numbers = #tpu.dot_dimension_numbers<[1], [0], [0], [1], [0, 0, 1, 1], [], []>} : vector<8x128xbf16>, vector<128x128xbf16>, vector<8x128xf32> -> vector<8x128xf32>
    %c3 = arith.constant 3 : index
    %c0_22 = arith.constant 0 : index
    %35 = vector.load %arg4[%c3, %c0_22] : memref<4x128xf32, #tpu.memory_space<vmem>>, vector<1x128xf32>
    %36 = vector.broadcast %35 : vector<1x128xf32> to vector<8x128xf32>
    %37 = arith.addf %34, %36 : vector<8x128xf32>
    %cst_23 = arith.constant 0.000000e+00 : f32
    %38 = vector.broadcast %cst_23 : f32 to vector<8x128xf32>
    %39 = arith.maximumf %37, %38 : vector<8x128xf32>
    %c0_24 = arith.constant 0 : index
    %c0_25 = arith.constant 0 : index
    %40 = vector.load %arg5[%c0_24, %c0_25] : memref<8x128xf32, #tpu.memory_space<vmem>>, vector<8x128xf32>
    tpu.vector_store %arg5[%c0_24, %c0_25], %39 {strides = array<i32>} : memref<8x128xf32, #tpu.memory_space<vmem>>, vector<8x128xf32>,
    return
  }
  func.func @transform_0(%arg0: i32) -> (i32, i32) {
    %c0_i32 = arith.constant 0 : i32
    %c0_i32_0 = arith.constant 0 : i32
    return %arg0, %c0_i32 : i32, i32
  }
  func.func @transform_1(%arg0: i32) -> (i32, i32) {
    %c0_i32 = arith.constant 0 : i32
    %c0_i32_0 = arith.constant 0 : i32
    %c0_i32_1 = arith.constant 0 : i32
    return %c0_i32, %c0_i32_0 : i32, i32
  }
  func.func @transform_2(%arg0: i32) -> (i32, i32, i32) {
    %c0_i32 = arith.constant 0 : i32
    %c0_i32_0 = arith.constant 0 : i32
    %c0_i32_1 = arith.constant 0 : i32
    %c0_i32_2 = arith.constant 0 : i32
    return %c0_i32, %c0_i32_0, %c0_i32_1 : i32, i32, i32
  }
  func.func @transform_3(%arg0: i32) -> (i32, i32) {
    %c0_i32 = arith.constant 0 : i32
    %c0_i32_0 = arith.constant 0 : i32
    %c0_i32_1 = arith.constant 0 : i32
    return %c0_i32, %c0_i32_0 : i32, i32
  }
  func.func @transform_4(%arg0: i32) -> (i32, i32) {
    %c0_i32 = arith.constant 0 : i32
    %c0_i32_0 = arith.constant 0 : i32
    return %arg0, %c0_i32 : i32, i32
  }
}

</mosaic_0001>

<bundles_post_ra>
// kernel: tpu_custom_call.1
= control target key start
LH: loop header
LB: loop body
LE: loop exit
PB: predicated region body
PF: predicated region fallthrough
CT: control target
= control target key end

     0   :  { %9 = vsyncpa [#allocation3], 0  ;;  %s674_s0 = inlined_call_operand.hbm [shape: f32[8,8], index: 0, kind: input, shape index: {}]   ;;  %s675_s1 = inlined_call_operand.hbm [shape: f32[8,128], index: 1, kind: input, shape index: {}]   ;;  %s676_s2 = inlined_call_operand.hbm [shape: f32[3,128,128], index: 2, kind: input, shape index: {}]   ;;  %s677_s3 = inlined_call_operand.vmem [shape: f32[4,128], index: 3, kind: input, shape index: {}]   ;;  %s678_s4 = inlined_call_operand.hbm [shape: f32[8,128], index: 4, kind: output, shape index: {}]  }
   0x1   :  { %10 = vsyncpa [#allocation6], 0 }
   0x2   :  { %11 = vsyncpa [#allocation4], 0  ;;  %s548_s15 = smov [#allocation5]   ;;  %s549_s17 = smov [#allocation2]  }
   0x3   :  { %s28_s16 = sshll.u32 %s548_s15, 4  ;;  %s18_s18 = sshll.u32 %s549_s17, 4  ;;  %s29_s16 = int_to_ptr.vmem [resolvable:$true] %s28_s16  ;;  %s19_s18 = int_to_ptr.vmem [resolvable:$true] %s18_s18 }
   0x4   :  { %s454_s21 = scalar_lea.hbm %s675_s1, 128 }
   0x5   :  { %p455_p0 = scmp.ne.s32.totalorder %s675_s1, %s454_s21  ;;  %p458_p1 = scmp.lt.u32.totalorder %s454_s21, %s675_s1 }
   0x7   :  { %p460_p2 = pnand %p458_p1, %p455_p0 }
   0x9   :  { %463 = shalt.err (!%p460_p2)
}
   0xa   :  { %s464_s26 = scalar_lea.vmem %s29_s16, 128  ;;  %p469_p4 = scmp.lt.s32.totalorder %s29_s16, %s29_s16 }
   0xb   :  { %p465_p3 = scmp.ne.s32.totalorder %s29_s16, %s464_s26  ;;  %p470_p5 = scmp.lt.s32.totalorder %s464_s26, %s464_s26 }
   0xd   :  { %p471_p6 = por %p470_p5, %p469_p4 }
   0xf   :  { %p472_p7 = pnand %p471_p6, %p465_p3 }
  0x11   :  { %475 = shalt.err (!%p472_p7)
}
  0x12   :  { %31 = dma.hbm_to_vmem [thread:$0]  %s675_s1, 128, %s29_s16, [#allocation6]  }
  0x13   :  { %s476_s5 = scalar_lea.hbm %s674_s0, 128 }
  0x14   :  { %p477_p8 = scmp.ne.s32.totalorder %s674_s0, %s476_s5  ;;  %p480_p9 = scmp.lt.u32.totalorder %s476_s5, %s674_s0 }
  0x16   :  { %p482_p10 = pnand %p480_p9, %p477_p8 }
  0x18   :  { %485 = shalt.err (!%p482_p10)
}
  0x19   :  { %s486_s10 = scalar_lea.vmem %s19_s18, 128  ;;  %p491_p12 = scmp.lt.s32.totalorder %s19_s18, %s19_s18 }
  0x1a   :  { %p487_p11 = scmp.ne.s32.totalorder %s19_s18, %s486_s10  ;;  %p492_p13 = scmp.lt.s32.totalorder %s486_s10, %s486_s10 }
  0x1c   :  { %p493_p0 = por %p492_p13, %p491_p12 }
  0x1e   :  { %p494_p1 = pnand %p493_p0, %p487_p11 }
  0x20   :  { %497 = shalt.err (!%p494_p1)
}
  0x21   :  { %21 = dma.hbm_to_vmem [thread:$0]  %s674_s0, 128, %s19_s18, [#allocation3]  }
  0x22   :  { %s550_s12 = smov [#allocation7]   ;;  %s498_s16 = scalar_lea.hbm %s676_s2, 6144 }
  0x23   :  { %s37_s13 = sshll.u32 %s550_s12, 4  ;;  %p499_p2 = scmp.ne.s32.totalorder %s676_s2, %s498_s16  ;;  %s38_s13 = int_to_ptr.vmem [resolvable:$true] %s37_s13 }
  0x24   :  { %p502_p3 = scmp.lt.u32.totalorder %s498_s16, %s676_s2 }
  0x26   :  { %p504_p4 = pnand %p502_p3, %p499_p2 }
  0x28   :  { %507 = shalt.err (!%p504_p4)
}
  0x29   :  { %s508_s22 = scalar_lea.vmem %s38_s13, 6144  ;;  %p513_p6 = scmp.lt.s32.totalorder %s38_s13, %s38_s13 }
  0x2a   :  { %p509_p5 = scmp.ne.s32.totalorder %s38_s13, %s508_s22  ;;  %p514_p7 = scmp.lt.s32.totalorder %s508_s22, %s508_s22 }
  0x2c   :  { %p515_p8 = por %p514_p7, %p513_p6 }
  0x2e   :  { %p516_p9 = pnand %p515_p8, %p509_p5 }
  0x30   :  { %519 = shalt.err (!%p516_p9)
}
  0x31   :  { %s551_s0 = smov 128   ;;  %s552_s18 = smov 8  }
  0x32   :  { %43 = dma.hbm_to_vmem [thread:$0]  %s676_s2, 6144, %s38_s13, [#allocation6], %s551_s0, %s551_s0, %s552_s18  }
  0x33   :  { %542 = dma.done.wait [#allocation3], 128  }
  0x34   :  { %543 = vsyncadd [#allocation3], 4294967168 }
  0x35   :  { %544 = dma.done.wait [#allocation6], 6272  }
  0x36   :  { %545 = vsyncadd [#allocation6], 4294961024  ;;  %v553_v0 = vmov 0.0   ;;  %vm554_vm0 = vmmov 0   ;;  %v57_v1 = vld [vmem:[#allocation5] sm:$0xff]  ;;  %vm69_vm1 = vcmask 1043456  }
  0x37   :  { %380 = vmatprep.subr.bf16.mxu0 %v553_v0  ;;  %382 = vmatprep.mubr.msk.bf16.mxu0 %vm554_vm0, %v553_v0  ;;  %v56_v2 = vld [vmem:[#allocation2] sm:$0xff]  ;;  %v114_v3 = vld [vmem:[#allocation7] sm:$0xff]  ;;  %v59_v4 = vpack.c.bf16 %v57_v1, %v57_v1  ;;  %v115_v5 = vld [vmem:[#allocation7 + $0x8] sm:$0xff]  ;;  %vm65_vm2 = vcmask 64512   ;;  %s555_s6 = smov [#allocation8]  }
  0x38   :  { %386 = vmatprep.subr.bf16.mxu1 %v553_v0  ;;  %402 = vmatprep.mubr.msk.bf16.mxu1 %vm554_vm0, %v553_v0  ;;  %v116_v6 = vld [vmem:[#allocation7 + $0x10] sm:$0xff]  ;;  %v117_v7 = vld [vmem:[#allocation7 + $0x18] sm:$0xff]  ;;  %v131_v8 = vpack.c.bf16 %v115_v5, %v114_v3  ;;  %v58_v10 = vpack.c.bf16 %v56_v2, %v56_v2  ;;  %v118_v12 = vld [vmem:[#allocation7 + $0x20] sm:$0xff]  ;;  %s336_s7 = sshll.u32 %s555_s6, 4  ;;  %s337_s7 = int_to_ptr.vmem [resolvable:$true] %s336_s7 }
  0x39   :  { %v71_v9 = vsel %vm69_vm1, %v59_v4, 0  ;;  %v132_v11 = vpack.c.bf16 %v117_v7, %v116_v6  ;;  %v119_v13 = vld [vmem:[#allocation7 + $0x28] sm:$0xff]  ;;  %v120_v15 = vld [vmem:[#allocation7 + $0x30] sm:$0xff]  ;;  %v121_v16 = vld [vmem:[#allocation7 + $0x38] sm:$0xff]  ;;  %s520_s8 = scalar_lea.vmem %s337_s7, 128  ;;  %p525_p11 = scmp.lt.s32.totalorder %s337_s7, %s337_s7 }
  0x3a   :  { %381 = vmatpush3.bf16.msra.mxu0 %v71_v9  ;;  %387 = vmatpush3.bf16.msra.mxu1 %v131_v8  ;;  %v133_v14 = vpack.c.bf16 %v119_v13, %v118_v12  ;;  %v134_v17 = vpack.c.bf16 %v121_v16, %v120_v15  ;;  %v122_v18 = vld [vmem:[#allocation7 + $0x40] sm:$0xff]  ;;  %v123_v19 = vld [vmem:[#allocation7 + $0x48] sm:$0xff]  ;;  %v124_v21 = vld [vmem:[#allocation7 + $0x50] sm:$0xff]  ;;  %p521_p10 = scmp.ne.s32.totalorder %s337_s7, %s520_s8  ;;  %p526_p12 = scmp.lt.s32.totalorder %s520_s8, %s520_s8 }
  0x3b   :  { %388 = vmatprep.subr.bf16.mxu1 %v553_v0  ;;  %406 = vmatprep.subr.bf16.mxu0 %v553_v0  ;;  %v135_v20 = vpack.c.bf16 %v123_v19, %v122_v18  ;;  %v125_v22 = vld [vmem:[#allocation7 + $0x58] sm:$0xff]  ;;  %v126_v24 = vld [vmem:[#allocation7 + $0x60] sm:$0xff]  ;;  %v127_v25 = vld [vmem:[#allocation7 + $0x68] sm:$0xff] }
  0x3c   :  { %v136_v23 = vpack.c.bf16 %v125_v22, %v124_v21  ;;  %v137_v26 = vpack.c.bf16 %v127_v25, %v126_v24  ;;  %v128_v27 = vld [vmem:[#allocation7 + $0x70] sm:$0xff]  ;;  %v129_v28 = vld [vmem:[#allocation7 + $0x78] sm:$0xff]  ;;  %v186_v30 = vld [vmem:[#allocation7 + $0x80] sm:$0xff]  ;;  %p527_p13 = por %p526_p12, %p525_p11 }
  0x3d   :  { %383 = vmatmul.mubr.msk.bf16.vlgmr.msra.gmra.mrb[0].mxu0 %vm65_vm2, %v58_v10  ;;  %v138_v29 = vpack.c.bf16 %v129_v28, %v128_v27  ;;  %v187_v31 = vld [vmem:[#allocation7 + $0x88] sm:$0xff]  ;;  %v188_v32 = vld [vmem:[#allocation7 + $0x90] sm:$0xff]  ;;  %v189_v34 = vld [vmem:[#allocation7 + $0x98] sm:$0xff] }
  0x3e   :  { %389 = vmatpush3.bf16.msra.mxu1 %v132_v11  ;;  %422 = vmatprep.mubr.msk.bf16.mxu0 %vm554_vm0, %v553_v0  ;;  %v203_v33 = vpack.c.bf16 %v187_v31, %v186_v30  ;;  %v204_v35 = vpack.c.bf16 %v189_v34, %v188_v32  ;;  %v190_v36 = vld [vmem:[#allocation7 + $0xa0] sm:$0xff]  ;;  %v191_v37 = vld [vmem:[#allocation7 + $0xa8] sm:$0xff]  ;;  %v192_v39 = vld [vmem:[#allocation7 + $0xb0] sm:$0xff]  ;;  %p528_p0 = pnand %p527_p13, %p521_p10 }
  0x3f   :  { %390 = vmatprep.subr.bf16.mxu1 %v553_v0  ;;  %v205_v38 = vpack.c.bf16 %v191_v37, %v190_v36  ;;  %v193_v40 = vld [vmem:[#allocation7 + $0xb8] sm:$0xff]  ;;  %v194_v42 = vld [vmem:[#allocation7 + $0xc0] sm:$0xff]  ;;  %v195_v43 = vld [vmem:[#allocation7 + $0xc8] sm:$0xff] }
  0x40   :  { %407 = vmatpush3.bf16.msra.mxu0 %v203_v33  ;;  %v206_v41 = vpack.c.bf16 %v193_v40, %v192_v39  ;;  %v207_v44 = vpack.c.bf16 %v195_v43, %v194_v42  ;;  %v196_v45 = vld [vmem:[#allocation7 + $0xd0] sm:$0xff]  ;;  %v197_v46 = vld [vmem:[#allocation7 + $0xd8] sm:$0xff]  ;;  %v198_v56 = vld [vmem:[#allocation7 + $0xe0] sm:$0xff] }
  0x41   :  { %408 = vmatprep.subr.bf16.mxu0 %v553_v0  ;;  %v208_v47 = vpack.c.bf16 %v197_v46, %v196_v45  ;;  %v346_v48 = vld [vmem:[%s677_s3] ss:$0 sm:$0xff]  ;;  %v199_v57 = vld [vmem:[#allocation7 + $0xe8] sm:$0xff]  ;;  %v201_v60 = vld [vmem:[#allocation7 + $0xf8] sm:$0xff] }
  0x42   :  { %391 = vmatpush3.bf16.msra.mxu1 %v133_v14  ;;  %v209_v58 = vpack.c.bf16 %v199_v57, %v198_v56  ;;  %v200_v59 = vld [vmem:[#allocation7 + $0xf0] sm:$0xff]  ;;  %v258_v62 = vld [vmem:[#allocation7 + $0x100] sm:$0xff]  ;;  %v259_v63 = vld [vmem:[#allocation7 + $0x108] sm:$0xff] }
  0x43   :  { %392 = vmatprep.subr.bf16.mxu1 %v553_v0  ;;  %v210_v61 = vpack.c.bf16 %v201_v60, %v200_v59  ;;  %v260_v1 = vld [vmem:[#allocation7 + $0x110] sm:$0xff]  ;;  %v275_v2 = vpack.c.bf16 %v259_v63, %v258_v62  ;;  %v261_v3 = vld [vmem:[#allocation7 + $0x118] sm:$0xff]  ;;  %v262_v5 = vld [vmem:[#allocation7 + $0x120] sm:$0xff] }
  0x44   :  { %409 = vmatpush3.bf16.msra.mxu0 %v204_v35  ;;  %v276_v4 = vpack.c.bf16 %v261_v3, %v260_v1  ;;  %v263_v6 = vld [vmem:[#allocation7 + $0x128] sm:$0xff]  ;;  %v264_v8 = vld [vmem:[#allocation7 + $0x130] sm:$0xff]  ;;  %v265_v9 = vld [vmem:[#allocation7 + $0x138] sm:$0xff] }
  0x45   :  { %410 = vmatprep.subr.bf16.mxu0 %v553_v0  ;;  %v277_v7 = vpack.c.bf16 %v263_v6, %v262_v5  ;;  %v278_v10 = vpack.c.bf16 %v265_v9, %v264_v8  ;;  %v266_v11 = vld [vmem:[#allocation7 + $0x140] sm:$0xff]  ;;  %v267_v12 = vld [vmem:[#allocation7 + $0x148] sm:$0xff]  ;;  %v268_v14 = vld [vmem:[#allocation7 + $0x150] sm:$0xff] }
  0x46   :  { %393 = vmatpush3.bf16.msra.mxu1 %v134_v17  ;;  %v279_v13 = vpack.c.bf16 %v267_v12, %v266_v11  ;;  %v269_v15 = vld [vmem:[#allocation7 + $0x158] sm:$0xff]  ;;  %v348_v17 = vld [vmem:[%s677_s3 + $0x1] ss:$0 sm:$0xff]  ;;  %v270_v25 = vld [vmem:[#allocation7 + $0x160] sm:$0xff] }
  0x47   :  { %394 = vmatprep.subr.bf16.mxu1 %v553_v0  ;;  %v280_v16 = vpack.c.bf16 %v269_v15, %v268_v14  ;;  %v272_v28 = vld [vmem:[#allocation7 + $0x170] sm:$0xff] }
  0x48   :  { %411 = vmatpush3.bf16.msra.mxu0 %v205_v38  ;;  %v349_v31 = vld [vmem:[%s677_s3 + $0x2] ss:$0 sm:$0xff] }
  0x49   :  { %412 = vmatprep.subr.bf16.mxu0 %v553_v0 }
  0x4a   :  { %395 = vmatpush3.bf16.msra.mxu1 %v135_v20 }
  0x4b   :  { %396 = vmatprep.subr.bf16.mxu1 %v553_v0 }
  0x4c   :  { %413 = vmatpush3.bf16.msra.mxu0 %v206_v41 }
  0x4d   :  { %414 = vmatprep.subr.bf16.mxu0 %v553_v0 }
  0x4e   :  { %397 = vmatpush3.bf16.msra.mxu1 %v136_v23 }
  0x4f   :  { %398 = vmatprep.subr.bf16.mxu1 %v553_v0 }
  0x50   :  { %415 = vmatpush3.bf16.msra.mxu0 %v207_v44 }
  0x51   :  { %416 = vmatprep.subr.bf16.mxu0 %v553_v0 }
  0x52   :  { %399 = vmatpush3.bf16.msra.mxu1 %v137_v26  ;;  %v271_v26 = vld [vmem:[#allocation7 + $0x168] sm:$0xff] }
  0x53   :  { %400 = vmatprep.subr.bf16.mxu1 %v553_v0  ;;  %v281_v27 = vpack.c.bf16 %v271_v26, %v270_v25 }
  0x54   :  { %417 = vmatpush3.bf16.msra.mxu0 %v208_v47 }
  0x55   :  { %418 = vmatprep.subr.bf16.mxu0 %v553_v0 }
  0x56   :  { %401 = vmatpush3.bf16.msra.mxu1 %v138_v29  ;;  %v273_v29 = vld [vmem:[#allocation7 + $0x178] sm:$0xff] }
  0x57   :  { %426 = vmatprep.subr.bf16.mxu1 %v553_v0  ;;  %v282_v30 = vpack.c.bf16 %v273_v29, %v272_v28 }
  0x58   :  { %419 = vmatpush3.bf16.msra.mxu0 %v209_v58 }
  0x59   :  { %420 = vmatprep.subr.bf16.mxu0 %v553_v0 }
  0x5c   :  { %421 = vmatpush3.bf16.msra.mxu0 %v210_v61 }
 0x110   :  { %v107_v49 = vpop.f32.mrb[0].mxu0 }
 0x111   :  { %v108_v50 = vadd.f32 %v346_v48, %v107_v49  ;;  %v384_v51 = vpop.f32.mrb[1].mxu0 }
 0x112   :  { %v110_v52 = vpop.f32.mrb[2].mxu0 }
 0x113   :  { %v113_v53 = vmax.f32 %v108_v50, 0.0  ;;  %v385_v54 = vpop.f32.mrb[3].mxu0 }
 0x115   :  { %v130_v55 = vpack.c.bf16 %v113_v53, %v113_v53 }
 0x117   :  { %403 = vmatmul.mubr.bf16.vlgmr.msra.gmra.mrb[0].mxu1 %v130_v55 }
 0x118   :  { %442 = vmatprep.mubr.msk.bf16.mxu1 %vm554_vm0, %v553_v0  ;;  %427 = vmatpush3.bf16.msra.mxu1 %v275_v2 }
 0x119   :  { %428 = vmatprep.subr.bf16.mxu1 %v553_v0 }
 0x11c   :  { %429 = vmatpush3.bf16.msra.mxu1 %v276_v4 }
 0x11d   :  { %430 = vmatprep.subr.bf16.mxu1 %v553_v0 }
 0x120   :  { %431 = vmatpush3.bf16.msra.mxu1 %v277_v7 }
 0x121   :  { %432 = vmatprep.subr.bf16.mxu1 %v553_v0 }
 0x124   :  { %433 = vmatpush3.bf16.msra.mxu1 %v278_v10 }
 0x125   :  { %434 = vmatprep.subr.bf16.mxu1 %v553_v0 }
 0x128   :  { %435 = vmatpush3.bf16.msra.mxu1 %v279_v13 }
 0x129   :  { %436 = vmatprep.subr.bf16.mxu1 %v553_v0 }
 0x12c   :  { %437 = vmatpush3.bf16.msra.mxu1 %v280_v16 }
 0x12d   :  { %438 = vmatprep.subr.bf16.mxu1 %v553_v0 }
 0x130   :  { %439 = vmatpush3.bf16.msra.mxu1 %v281_v27 }
 0x131   :  { %440 = vmatprep.subr.bf16.mxu1 %v553_v0  ;;  %v350_v0 = vld [vmem:[%s677_s3 + $0x3] ss:$0 sm:$0xff] }
 0x134   :  { %441 = vmatpush3.bf16.msra.mxu1 %v282_v30 }
 0x1ea   :  { %v178_v18 = vpop.f32.mrb[0].mxu1 }
 0x1eb   :  { %v179_v19 = vadd.f32 %v348_v17, %v178_v18  ;;  %v404_v20 = vpop.f32.mrb[1].mxu1 }
 0x1ec   :  { %v181_v21 = vpop.f32.mrb[2].mxu1 }
 0x1ed   :  { %v184_v22 = vmax.f32 %v179_v19, 0.0  ;;  %v405_v23 = vpop.f32.mrb[3].mxu1 }
 0x1ef   :  { %v202_v24 = vpack.c.bf16 %v184_v22, %v184_v22 }
 0x1f1   :  { %423 = vmatmul.mubr.bf16.vlgmr.msra.gmra.mrb[4].mxu0 %v202_v24 }
 0x2c4   :  { %v250_v32 = vpop.f32.mrb[4].mxu0 }
 0x2c5   :  { %v251_v33 = vadd.f32 %v349_v31, %v250_v32  ;;  %v424_v34 = vpop.f32.mrb[5].mxu0 }
 0x2c6   :  { %v253_v35 = vpop.f32.mrb[6].mxu0 }
 0x2c7   :  { %v256_v36 = vmax.f32 %v251_v33, 0.0  ;;  %v425_v37 = vpop.f32.mrb[7].mxu0 }
 0x2c9   :  { %v274_v38 = vpack.c.bf16 %v256_v36, %v256_v36 }
 0x2cb   :  { %443 = vmatmul.mubr.bf16.vlgmr.msra.gmra.mrb[4].mxu1 %v274_v38 }
 0x39e   :  { %v322_v39 = vpop.f32.mrb[4].mxu1 }
 0x39f   :  { %v323_v40 = vadd.f32 %v350_v0, %v322_v39  ;;  %v444_v41 = vpop.f32.mrb[5].mxu1 }
 0x3a0   :  { %v325_v42 = vpop.f32.mrb[6].mxu1 }
 0x3a1   :  { %v328_v43 = vmax.f32 %v323_v40, 0.0  ;;  %v445_v44 = vpop.f32.mrb[7].mxu1 }
 0x3a3   :  { %329 = vst [vmem:[#allocation8] sm:$0xff] %v328_v43 }
 0x3a4   :  { %531 = shalt.err (!%p528_p0)
}
 0x3a5   :  { %s532_s3 = scalar_lea.hbm %s678_s4, 128 }
 0x3a6   :  { %p533_p1 = scmp.ne.s32.totalorder %s678_s4, %s532_s3  ;;  %p536_p2 = scmp.lt.u32.totalorder %s532_s3, %s678_s4 }
 0x3a8   :  { %p538_p3 = pnand %p536_p2, %p533_p1 }
 0x3aa   :  { %541 = shalt.err (!%p538_p3)
}
 0x3ab   :  { %339 = dma.vmem_to_hbm [thread:$0]  %s337_s7, 128, %s678_s4, [#allocation4]  }
 0x3ac   :  { %546 = dma.done.wait [#allocation4], 128  }
 0x3ad   :  { %547 = vsyncadd [#allocation4], 4294967168 }
 0x3ae   :  { %343 = vsyncpa [#allocation3], 1 }
 0x3af   :  { %344 = vsyncpa [#allocation6], 1 }
 0x3b0   :  { %345 = vsyncpa [#allocation4], 1 }

</bundles_post_ra>
